<compile_context>
chip_gen: v7x
topology: tpu7x:2x2x1
jax: 0.10.0
libtpu: 0.0.40
codegen_flags: <defaults>
</compile_context>

<pallas_src>
import functools

import jax
import jax.numpy as jnp
from jax.experimental import pallas as pl
from jax.experimental.pallas import tpu as pltpu


# ----------------------------------------------------------------------------
# Fused Pallas kernel: entire GCN embedding forward in one body.
# ----------------------------------------------------------------------------
def fused_gcn_kernel(adj_ref, x_ref, w_ref, b_ref, probs_ref, support_ref,
                     *, n_block_layers, embedding_dim):
    adj = adj_ref[...]                      # bf16 [N, N]
    h = x_ref[...]                          # f32  [N, PAD]

    def gc(h_f32, li):
        # (A @ h + h) @ W + b  -- add_self folded in-kernel (no wrapper A+I).
        # bf16 MXU operands, f32 accumulation; the `+ h_f32` add_self stays in f32.
        h_b = h_f32.astype(jnp.bfloat16)
        t = jnp.dot(adj, h_b, preferred_element_type=jnp.float32) + h_f32
        # NOTE: with un-padded shapes, reorder to adj @ (h @ W) when F_in > F_out;
        # here both dims are padded to the same width so the order is a wash.
        y = jnp.dot(t.astype(jnp.bfloat16), w_ref[li],
                    preferred_element_type=jnp.float32)
        return y + b_ref[li]                # broadcast [1, PAD] bias, f32

    # --- first layer: relu ----------------------------------------------------
    h = jnp.maximum(gc(h, 0), 0.0)

    # --- embedding block: L2-normalize(dim=-1), matches F.normalize(eps=1e-12) --
    for i in range(n_block_layers):
        y = gc(h, 1 + i)
        sumsq = jnp.sum(y * y, axis=-1, keepdims=True)   # padded cols are exactly 0
        # clamp the SQUARED sum at eps^2 == (1e-12)^2 to preserve torch's
        # max(||y||, 1e-12); rsqrt rides the otherwise-idle EUP slot.
        h = y * jax.lax.rsqrt(jnp.maximum(sumsq, 1e-24))

    support_ref[...] = h.astype(support_ref.dtype)       # lane-dense [N, PAD] store

    # --- final layer: softmax(dim=-1) over the REAL embedding columns only -----
    y = gc(h, 1 + n_block_layers)
    col = jax.lax.broadcasted_iota(jnp.int32, y.shape, 1)
    y = jnp.where(col < embedding_dim, y, jnp.float32(-1e30))   # mask padded logits
    m = jnp.max(y, axis=-1, keepdims=True)
    e = jnp.exp(y - m)
    # EUP approximate reciprocal instead of a divide (~1e-3 relative error on probs).
    probs = e * pl.reciprocal(jnp.sum(e, axis=-1, keepdims=True), approx=True)
    probs_ref[...] = probs.astype(probs_ref.dtype)        # lane-dense [N, PAD] store


# ----------------------------------------------------------------------------
# Wrapper: pad to lane width, stack params, bf16 MXU operands, one pallas_call.
# ----------------------------------------------------------------------------
@jax.jit
def gcn_forward(params, x, adj):
    N, input_dim = x.shape
    hidden_dim = params["first"]["w"].shape[1]
    embedding_dim = params["final"]["w"].shape[1]
    n_block = len(params["block"])
    n_layers_total = n_block + 2

    # Uniform lane-dense width for every feature dimension.
    max_dim = max(input_dim, hidden_dim, embedding_dim)
    PAD = ((max_dim + 127) // 128) * 128

    def pad_w(w):
        return jnp.pad(w, ((0, PAD - w.shape[0]), (0, PAD - w.shape[1])))

    def pad_b(b):
        return jnp.pad(b, ((0, 0), (0, PAD - b.shape[1])))

    layers = [params["first"]] + list(params["block"]) + [params["final"]]
    w_stack = jnp.stack([pad_w(l["w"]) for l in layers]).astype(jnp.bfloat16)
    b_stack = jnp.stack([pad_b(l["b"]) for l in layers]).astype(jnp.float32)

    x_pad = jnp.pad(x.astype(jnp.float32), ((0, 0), (0, PAD - input_dim)))
    adj_b = adj.astype(jnp.bfloat16)        # halves the N^2 DMA/VMEM footprint

    inputs = [adj_b, x_pad, w_stack, b_stack]

    # Advisory cost estimate so XLA does not serialize around the tiny custom call.
    flops = n_layers_total * (2 * N * N * PAD + 2 * N * PAD * PAD + 3 * N * PAD)
    transcendentals = N * PAD + N * (n_block + 1)            # exp + rsqrt/recip
    in_bytes = sum(int(a.size) * a.dtype.itemsize for a in inputs)
    out_bytes = 2 * N * PAD * 4
    bytes_accessed = in_bytes + out_bytes

    # Scoped-VMEM limit sized from the resident set with headroom (defaults are only
    # 16/32 MiB on v5e/v6e); keep it well under v7x's 64 MiB physical ceiling.
    vmem_limit = int(min(64 * 2**20, max(16 * 2**20, 4 * (in_bytes + out_bytes))))

    kernel = functools.partial(fused_gcn_kernel,
                               n_block_layers=n_block,
                               embedding_dim=embedding_dim)

    probs_pad, support_pad = pl.pallas_call(
        kernel,
        out_shape=(
            jax.ShapeDtypeStruct((N, PAD), jnp.float32),
            jax.ShapeDtypeStruct((N, PAD), jnp.float32),
        ),
        # No grid: single invocation, whole arrays resident in VMEM.
        in_specs=[pl.BlockSpec(memory_space=pltpu.MemorySpace.VMEM) for _ in inputs],
        out_specs=(
            pl.BlockSpec(memory_space=pltpu.MemorySpace.VMEM),
            pl.BlockSpec(memory_space=pltpu.MemorySpace.VMEM),
        ),
        compiler_params=pltpu.CompilerParams(vmem_limit_bytes=vmem_limit),
        cost_estimate=pl.CostEstimate(
            flops=flops,
            transcendentals=transcendentals,
            bytes_accessed=bytes_accessed,
        ),
    )(*inputs)

    # Slice lane-dense slabs back to the real widths (padded columns are exactly 0).
    return probs_pad[:, :embedding_dim], support_pad[:, :hidden_dim]


# ----------------------------------------------------------------------------
# Parameter construction + pure-JAX reference (for correctness check).
# ----------------------------------------------------------------------------
def init_params(key, input_dim, hidden_dim, embedding_dim, n_embedding_layers):
    def init_layer(k, f_in, f_out):
        kw, kb = jax.random.split(k)
        scale = 1.0 / jnp.sqrt(jnp.float32(f_in))
        w = jax.random.uniform(kw, (f_in, f_out), jnp.float32, -scale, scale)
        b = jax.random.uniform(kb, (1, f_out), jnp.float32, -scale, scale)
        return {"w": w, "b": b}

    keys = jax.random.split(key, n_embedding_layers + 2)
    return {
        "first": init_layer(keys[0], input_dim, hidden_dim),
        "block": [
            init_layer(keys[1 + i], hidden_dim, hidden_dim)
            for i in range(n_embedding_layers)
        ],
        "final": init_layer(keys[-1], hidden_dim, embedding_dim),
    }


def gcn_reference(params, x, adj):
    def gc(h, w, b):
        return (adj @ h + h) @ w + b

    h = jnp.maximum(gc(x, params["first"]["w"], params["first"]["b"]), 0.0)
    for layer in params["block"]:
        y = gc(h, layer["w"], layer["b"])
        nrm = jnp.sqrt(jnp.sum(y * y, axis=-1, keepdims=True))
        h = y / jnp.maximum(nrm, 1e-12)
    out = gc(h, params["final"]["w"], params["final"]["b"])
    return jax.nn.softmax(out, axis=-1), h


if __name__ == "__main__":
    # Small, deterministic shapes consistent with the module.
    N = 16                  # number of graph nodes
    input_dim = 16          # input_dimension
    hidden_dim = 32         # arguments.hidden_dimension
    embedding_dim = 32      # arguments.embedding_dimension
    n_embedding_layers = 2  # arguments.n_embedding_layers

    key = jax.random.PRNGKey(0)
    k_x, k_adj, k_params = jax.random.split(key, 3)

    x = jax.random.normal(k_x, (N, input_dim), jnp.float32)

    # Deterministic symmetric normalized adjacency: A_hat = D^-1/2 (A + I) D^-1/2
    a = (jax.random.uniform(k_adj, (N, N)) > 0.7).astype(jnp.float32)
    a = jnp.maximum(a, a.T)
    a = a + jnp.eye(N, dtype=jnp.float32)
    d_inv_sqrt = 1.0 / jnp.sqrt(jnp.sum(a, axis=-1))
    adj = a * d_inv_sqrt[:, None] * d_inv_sqrt[None, :]

    params = init_params(k_params, input_dim, hidden_dim, embedding_dim,
                         n_embedding_layers)

    probs, support = gcn_forward(params, x, adj)
    jax.block_until_ready((probs, support))

    assert probs.shape == (N, embedding_dim)
    assert support.shape == (N, hidden_dim)
    assert bool(jnp.all(jnp.isfinite(probs))) and bool(jnp.all(jnp.isfinite(support)))
    # softmax rows sum to 1 (within approx-reciprocal tolerance ~1e-3)
    assert bool(jnp.allclose(jnp.sum(probs, axis=-1), 1.0, atol=5e-3))

    # Verify against a pure-JAX f32 reference of the torch forward semantics.
    # Tolerances are slightly looser than before because the kernel feeds the MXU
    # bf16 operands (f32 accumulation + f32 epilogues).
    probs_ref, support_ref = gcn_reference(params, x, adj)
    assert bool(jnp.allclose(support, support_ref, atol=1e-2, rtol=2e-2))
    assert bool(jnp.allclose(probs, probs_ref, atol=1e-2, rtol=2e-2))

    print("KERNEL_OK")
</pallas_src>

<mosaic_0001>
module attributes {stable_mosaic.version = 11 : i64} {
  func.func @fused_gcn_kernel(%arg0: memref<16x16xbf16, #tpu.memory_space<vmem>>, %arg1: memref<16x128xf32, #tpu.memory_space<vmem>>, %arg2: memref<4x128x128xbf16, #tpu.memory_space<vmem>>, %arg3: memref<4x1x128xf32, #tpu.memory_space<vmem>>, %arg4: memref<16x128xf32, #tpu.memory_space<vmem>>, %arg5: memref<16x128xf32, #tpu.memory_space<vmem>>) attributes {dimension_semantics = [], scalar_prefetch = 0 : i64, scratch_operands = 0 : i64, tpu.core_type = #tpu.core_type<tc>} {
    %c0 = arith.constant 0 : index
    %c0_0 = arith.constant 0 : index
    %0 = vector.load %arg0[%c0, %c0_0] : memref<16x16xbf16, #tpu.memory_space<vmem>>, vector<16x16xbf16>
    %c0_1 = arith.constant 0 : index
    %c0_2 = arith.constant 0 : index
    %1 = vector.load %arg1[%c0_1, %c0_2] : memref<16x128xf32, #tpu.memory_space<vmem>>, vector<16x128xf32>
    %2 = arith.truncf %1 : vector<16x128xf32> to vector<16x128xbf16>
    %cst = arith.constant dense<0.000000e+00> : vector<16x128xf32>
    %3 = tpu.matmul %0, %2, %cst {dimension_numbers = #tpu.dot_dimension_numbers<[1], [0], [0], [1], [0, 0, 1, 1], [], []>} : vector<16x16xbf16>, vector<16x128xbf16>, vector<16x128xf32> -> vector<16x128xf32>
    %4 = arith.addf %3, %1 : vector<16x128xf32>
    %5 = arith.truncf %4 : vector<16x128xf32> to vector<16x128xbf16>
    %c0_3 = arith.constant 0 : index
    %c0_4 = arith.constant 0 : index
    %c0_5 = arith.constant 0 : index
    %6 = vector.load %arg2[%c0_3, %c0_4, %c0_5] : memref<4x128x128xbf16, #tpu.memory_space<vmem>>, vector<1x128x128xbf16>
    %7 = vector.shape_cast %6 : vector<1x128x128xbf16> to vector<128x128xbf16>
    %cst_6 = arith.constant dense<0.000000e+00> : vector<16x128xf32>
    %8 = tpu.matmul %5, %7, %cst_6 {dimension_numbers = #tpu.dot_dimension_numbers<[1], [0], [0], [1], [0, 0, 1, 1], [], []>} : vector<16x128xbf16>, vector<128x128xbf16>, vector<16x128xf32> -> vector<16x128xf32>
    %c0_7 = arith.constant 0 : index
    %c0_8 = arith.constant 0 : index
    %c0_9 = arith.constant 0 : index
    %9 = vector.load %arg3[%c0_7, %c0_8, %c0_9] : memref<4x1x128xf32, #tpu.memory_space<vmem>>, vector<1x1x128xf32>
    %10 = vector.shape_cast %9 : vector<1x1x128xf32> to vector<1x128xf32>
    %11 = vector.broadcast %10 : vector<1x128xf32> to vector<16x128xf32>
    %12 = arith.addf %8, %11 : vector<16x128xf32>
    %cst_10 = arith.constant 0.000000e+00 : f32
    %13 = vector.broadcast %cst_10 : f32 to vector<16x128xf32>
    %14 = arith.maximumf %12, %13 : vector<16x128xf32>
    %15 = arith.truncf %14 : vector<16x128xf32> to vector<16x128xbf16>
    %cst_11 = arith.constant dense<0.000000e+00> : vector<16x128xf32>
    %16 = tpu.matmul %0, %15, %cst_11 {dimension_numbers = #tpu.dot_dimension_numbers<[1], [0], [0], [1], [0, 0, 1, 1], [], []>} : vector<16x16xbf16>, vector<16x128xbf16>, vector<16x128xf32> -> vector<16x128xf32>
    %17 = arith.addf %16, %14 : vector<16x128xf32>
    %18 = arith.truncf %17 : vector<16x128xf32> to vector<16x128xbf16>
    %c1 = arith.constant 1 : index
    %c0_12 = arith.constant 0 : index
    %c0_13 = arith.constant 0 : index
    %19 = vector.load %arg2[%c1, %c0_12, %c0_13] : memref<4x128x128xbf16, #tpu.memory_space<vmem>>, vector<1x128x128xbf16>
    %20 = vector.shape_cast %19 : vector<1x128x128xbf16> to vector<128x128xbf16>
    %cst_14 = arith.constant dense<0.000000e+00> : vector<16x128xf32>
    %21 = tpu.matmul %18, %20, %cst_14 {dimension_numbers = #tpu.dot_dimension_numbers<[1], [0], [0], [1], [0, 0, 1, 1], [], []>} : vector<16x128xbf16>, vector<128x128xbf16>, vector<16x128xf32> -> vector<16x128xf32>
    %c1_15 = arith.constant 1 : index
    %c0_16 = arith.constant 0 : index
    %c0_17 = arith.constant 0 : index
    %22 = vector.load %arg3[%c1_15, %c0_16, %c0_17] : memref<4x1x128xf32, #tpu.memory_space<vmem>>, vector<1x1x128xf32>
    %23 = vector.shape_cast %22 : vector<1x1x128xf32> to vector<1x128xf32>
    %24 = vector.broadcast %23 : vector<1x128xf32> to vector<16x128xf32>
    %25 = arith.addf %21, %24 : vector<16x128xf32>
    %26 = arith.mulf %25, %25 : vector<16x128xf32>
    %cst_18 = arith.constant dense<0.000000e+00> : vector<16xf32>
    %27 = vector.multi_reduction <add>, %26, %cst_18 [1] : vector<16x128xf32> to vector<16xf32>
    %28 = vector.shape_cast %27 : vector<16xf32> to vector<16x1xf32>
    %cst_19 = arith.constant 1.000000e-24 : f32
    %29 = vector.broadcast %cst_19 : f32 to vector<16x1xf32>
    %30 = arith.maximumf %28, %29 : vector<16x1xf32>
    %31 = math.rsqrt %30 : vector<16x1xf32>
    %32 = vector.broadcast %31 : vector<16x1xf32> to vector<16x128xf32>
    %33 = arith.mulf %25, %32 : vector<16x128xf32>
    %34 = arith.truncf %33 : vector<16x128xf32> to vector<16x128xbf16>
    %cst_20 = arith.constant dense<0.000000e+00> : vector<16x128xf32>
    %35 = tpu.matmul %0, %34, %cst_20 {dimension_numbers = #tpu.dot_dimension_numbers<[1], [0], [0], [1], [0, 0, 1, 1], [], []>} : vector<16x16xbf16>, vector<16x128xbf16>, vector<16x128xf32> -> vector<16x128xf32>
    %36 = arith.addf %35, %33 : vector<16x128xf32>
    %37 = arith.truncf %36 : vector<16x128xf32> to vector<16x128xbf16>
    %c2 = arith.constant 2 : index
    %c0_21 = arith.constant 0 : index
    %c0_22 = arith.constant 0 : index
    %38 = vector.load %arg2[%c2, %c0_21, %c0_22] : memref<4x128x128xbf16, #tpu.memory_space<vmem>>, vector<1x128x128xbf16>
    %39 = vector.shape_cast %38 : vector<1x128x128xbf16> to vector<128x128xbf16>
    %cst_23 = arith.constant dense<0.000000e+00> : vector<16x128xf32>
    %40 = tpu.matmul %37, %39, %cst_23 {dimension_numbers = #tpu.dot_dimension_numbers<[1], [0], [0], [1], [0, 0, 1, 1], [], []>} : vector<16x128xbf16>, vector<128x128xbf16>, vector<16x128xf32> -> vector<16x128xf32>
    %c2_24 = arith.constant 2 : index
    %c0_25 = arith.constant 0 : index
    %c0_26 = arith.constant 0 : index
    %41 = vector.load %arg3[%c2_24, %c0_25, %c0_26] : memref<4x1x128xf32, #tpu.memory_space<vmem>>, vector<1x1x128xf32>
    %42 = vector.shape_cast %41 : vector<1x1x128xf32> to vector<1x128xf32>
    %43 = vector.broadcast %42 : vector<1x128xf32> to vector<16x128xf32>
    %44 = arith.addf %40, %43 : vector<16x128xf32>
    %45 = arith.mulf %44, %44 : vector<16x128xf32>
    %cst_27 = arith.constant dense<0.000000e+00> : vector<16xf32>
    %46 = vector.multi_reduction <add>, %45, %cst_27 [1] : vector<16x128xf32> to vector<16xf32>
    %47 = vector.shape_cast %46 : vector<16xf32> to vector<16x1xf32>
    %cst_28 = arith.constant 1.000000e-24 : f32
    %48 = vector.broadcast %cst_28 : f32 to vector<16x1xf32>
    %49 = arith.maximumf %47, %48 : vector<16x1xf32>
    %50 = math.rsqrt %49 : vector<16x1xf32>
    %51 = vector.broadcast %50 : vector<16x1xf32> to vector<16x128xf32>
    %52 = arith.mulf %44, %51 : vector<16x128xf32>
    %c0_29 = arith.constant 0 : index
    %c0_30 = arith.constant 0 : index
    %53 = vector.load %arg5[%c0_29, %c0_30] : memref<16x128xf32, #tpu.memory_space<vmem>>, vector<16x128xf32>
    tpu.vector_store %arg5[%c0_29, %c0_30], %52 {strides = array<i32>} : memref<16x128xf32, #tpu.memory_space<vmem>>, vector<16x128xf32>,
    %54 = arith.truncf %52 : vector<16x128xf32> to vector<16x128xbf16>
    %cst_31 = arith.constant dense<0.000000e+00> : vector<16x128xf32>
    %55 = tpu.matmul %0, %54, %cst_31 {dimension_numbers = #tpu.dot_dimension_numbers<[1], [0], [0], [1], [0, 0, 1, 1], [], []>} : vector<16x16xbf16>, vector<16x128xbf16>, vector<16x128xf32> -> vector<16x128xf32>
    %56 = arith.addf %55, %52 : vector<16x128xf32>
    %57 = arith.truncf %56 : vector<16x128xf32> to vector<16x128xbf16>
    %c3 = arith.constant 3 : index
    %c0_32 = arith.constant 0 : index
    %c0_33 = arith.constant 0 : index
    %58 = vector.load %arg2[%c3, %c0_32, %c0_33] : memref<4x128x128xbf16, #tpu.memory_space<vmem>>, vector<1x128x128xbf16>
    %59 = vector.shape_cast %58 : vector<1x128x128xbf16> to vector<128x128xbf16>
    %cst_34 = arith.constant dense<0.000000e+00> : vector<16x128xf32>
    %60 = tpu.matmul %57, %59, %cst_34 {dimension_numbers = #tpu.dot_dimension_numbers<[1], [0], [0], [1], [0, 0, 1, 1], [], []>} : vector<16x128xbf16>, vector<128x128xbf16>, vector<16x128xf32> -> vector<16x128xf32>
    %c3_35 = arith.constant 3 : index
    %c0_36 = arith.constant 0 : index
    %c0_37 = arith.constant 0 : index
    %61 = vector.load %arg3[%c3_35, %c0_36, %c0_37] : memref<4x1x128xf32, #tpu.memory_space<vmem>>, vector<1x1x128xf32>
    %62 = vector.shape_cast %61 : vector<1x1x128xf32> to vector<1x128xf32>
    %63 = vector.broadcast %62 : vector<1x128xf32> to vector<16x128xf32>
    %64 = arith.addf %60, %63 : vector<16x128xf32>
    %65 = tpu.iota {dimensions = array<i32: 1>} : vector<16x128xi32>
    %c32_i32 = arith.constant 32 : i32
    %66 = vector.broadcast %c32_i32 : i32 to vector<16x128xi32>
    %67 = arith.cmpi slt, %65, %66 : vector<16x128xi32>
    %cst_38 = arith.constant -1.000000e+30 : f32
    %68 = vector.broadcast %cst_38 : f32 to vector<16x128xf32>
    %69 = arith.select %67, %64, %68 : vector<16x128xi1>, vector<16x128xf32>
    %cst_39 = arith.constant dense<0xFF800000> : vector<16xf32>
    %70 = vector.multi_reduction <maximumf>, %69, %cst_39 [1] : vector<16x128xf32> to vector<16xf32>
    %71 = vector.shape_cast %70 : vector<16xf32> to vector<16x1xf32>
    %72 = vector.broadcast %71 : vector<16x1xf32> to vector<16x128xf32>
    %73 = arith.subf %69, %72 : vector<16x128xf32>
    %74 = math.exp %73 : vector<16x128xf32>
    %cst_40 = arith.constant dense<0.000000e+00> : vector<16xf32>
    %75 = vector.multi_reduction <add>, %74, %cst_40 [1] : vector<16x128xf32> to vector<16xf32>
    %76 = vector.shape_cast %75 : vector<16xf32> to vector<16x1xf32>
    %77 = tpu.reciprocal %76 {approx = true} : vector<16x1xf32> -> vector<16x1xf32>
    %78 = vector.broadcast %77 : vector<16x1xf32> to vector<16x128xf32>
    %79 = arith.mulf %74, %78 : vector<16x128xf32>
    %c0_41 = arith.constant 0 : index
    %c0_42 = arith.constant 0 : index
    %80 = vector.load %arg4[%c0_41, %c0_42] : memref<16x128xf32, #tpu.memory_space<vmem>>, vector<16x128xf32>
    tpu.vector_store %arg4[%c0_41, %c0_42], %79 {strides = array<i32>} : memref<16x128xf32, #tpu.memory_space<vmem>>, vector<16x128xf32>,
    return
  }
}

</mosaic_0001>

<bundles_post_ra>
// kernel: gcn_forward.1
= control target key start
LH: loop header
LB: loop body
LE: loop exit
PB: predicated region body
PF: predicated region fallthrough
CT: control target
= control target key end

     0   :  { %11 = vsyncpa [#allocation3], 0  ;;  %v1089_v2 = vmov 0.0   ;;  %vm1090_vm0 = vmmov 0   ;;  %vm32_vm1 = vcmask 130048   ;;  %s1334_s0 = inlined_call_operand.vmem [shape: bf16[16,16], index: 0, kind: input, shape index: {}]   ;;  %s1335_s1 = inlined_call_operand.vmem [shape: f32[16,128], index: 1, kind: input, shape index: {}]   ;;  %s1336_s2 = inlined_call_operand.vmem [shape: bf16[4,128,128], index: 2, kind: input, shape index: {}]   ;;  %s1337_s3 = inlined_call_operand.vmem [shape: f32[4,1,128], index: 3, kind: input, shape index: {}]   ;;  %s1338_s4 = inlined_call_operand.hbm [shape: f32[16,128], index: 4, kind: output, shape index: {0}]   ;;  %s1339_s5 = inlined_call_operand.hbm [shape: f32[16,128], index: 5, kind: output, shape index: {1}]  }
   0x1   :  { %v24_v0 = vld [vmem:[%s1335_s1] sm:$0xff]  ;;  %v25_v1 = vld [vmem:[%s1335_s1 + $0x8] sm:$0xff]  ;;  %882 = vmatprep.subr.bf16.mxu1 %v1089_v2  ;;  %884 = vmatprep.mubr.msk.bf16.mxu1 %vm1090_vm0, %v1089_v2  ;;  %v995_v7 = vld [vmem:[%s1336_s2 + $0x10] sm:$0xff]  }
   0x2   :  { %v26_v3 = vpack.c.bf16 %v25_v1, %v24_v0  ;;  %v1137_v4 = vld [vmem:[%s1334_s0] sm:$0xff]   ;;  %908 = vmatprep.subr.bf16.mxu0 %v1089_v2  ;;  %910 = vmatprep.mubr.msk.bf16.mxu0 %vm1090_vm0, %v1089_v2  ;;  %v994_v6 = vld [vmem:[%s1336_s2 + $0x8] sm:$0xff]   ;;  %v996_v8 = vld [vmem:[%s1336_s2 + $0x18] sm:$0xff]  }
   0x3   :  { %v993_v5 = vld [vmem:[%s1336_s2] sm:$0xff]   ;;  %v998_v10 = vld [vmem:[%s1336_s2 + $0x28] sm:$0xff]  }
   0x4   :  { %883 = vmatpush3.bf16.msra.mxu1 %v26_v3  ;;  %v997_v9 = vld [vmem:[%s1336_s2 + $0x20] sm:$0xff]  }
   0x5   :  { %888 = vmatprep.subr.bf16.mxu1 %v1089_v2 }
   0x7   :  { %885 = vmatmul.mubr.msk.bf16.vlgmr.msra.gmra.mrb[0].mxu1 %vm32_vm1, %v1137_v4 }
   0x8   :  { %889 = vmatpush3.bf16.msra.mxu1 %v993_v5  ;;  %904 = vmatprep.mubr.msk.bf16.mxu1 %vm1090_vm0, %v1089_v2 }
   0x9   :  { %890 = vmatprep.subr.bf16.mxu1 %v1089_v2 }
   0xc   :  { %891 = vmatpush3.bf16.msra.mxu1 %v994_v6 }
   0xd   :  { %892 = vmatprep.subr.bf16.mxu1 %v1089_v2 }
  0x10   :  { %893 = vmatpush3.bf16.msra.mxu1 %v995_v7 }
  0x11   :  { %894 = vmatprep.subr.bf16.mxu1 %v1089_v2 }
  0x14   :  { %895 = vmatpush3.bf16.msra.mxu1 %v996_v8 }
  0x15   :  { %896 = vmatprep.subr.bf16.mxu1 %v1089_v2 }
  0x18   :  { %897 = vmatpush3.bf16.msra.mxu1 %v997_v9 }
  0x19   :  { %898 = vmatprep.subr.bf16.mxu1 %v1089_v2 }
  0x1a   :  { %12 = vsyncpa [#allocation5], 0  ;;  %v999_v11 = vld [vmem:[%s1336_s2 + $0x30] sm:$0xff]   ;;  %v1000_v12 = vld [vmem:[%s1336_s2 + $0x38] sm:$0xff]  }
  0x1b   :  { %v748_v20 = vld [vmem:[%s1337_s3] ss:$0 sm:$0xff]  ;;  %v1002_v31 = vld [vmem:[%s1336_s2 + $0x48] sm:$0xff]   ;;  %v1003_v32 = vld [vmem:[%s1336_s2 + $0x50] sm:$0xff]  }
  0x1c   :  { %899 = vmatpush3.bf16.msra.mxu1 %v998_v10  ;;  %v1001_v30 = vld [vmem:[%s1336_s2 + $0x40] sm:$0xff]   ;;  %v1004_v33 = vld [vmem:[%s1336_s2 + $0x58] sm:$0xff]   ;;  %v1006_v35 = vld [vmem:[%s1336_s2 + $0x68] sm:$0xff]  }
  0x1d   :  { %900 = vmatprep.subr.bf16.mxu1 %v1089_v2  ;;  %v1005_v34 = vld [vmem:[%s1336_s2 + $0x60] sm:$0xff]   ;;  %v1007_v36 = vld [vmem:[%s1336_s2 + $0x70] sm:$0xff]   ;;  %v1008_v37 = vld [vmem:[%s1336_s2 + $0x78] sm:$0xff]  }
  0x1e   :  { %v775_v45 = vld [vmem:[%s1337_s3 + $0x1] ss:$0 sm:$0xff]  ;;  %v1012_v3 = vld [vmem:[%s1336_s2 + $0x98] sm:$0xff]   ;;  %v1014_v6 = vld [vmem:[%s1336_s2 + $0xa8] sm:$0xff]  }
  0x1f   :  { %v1009_v63 = vld [vmem:[%s1336_s2 + $0x80] sm:$0xff]   ;;  %v1015_v7 = vld [vmem:[%s1336_s2 + $0xb0] sm:$0xff]   ;;  %v1016_v8 = vld [vmem:[%s1336_s2 + $0xb8] sm:$0xff]  }
  0x20   :  { %901 = vmatpush3.bf16.msra.mxu1 %v999_v11  ;;  %v1013_v5 = vld [vmem:[%s1336_s2 + $0xa0] sm:$0xff]  }
  0x21   :  { %902 = vmatprep.subr.bf16.mxu1 %v1089_v2 }
  0x24   :  { %903 = vmatpush3.bf16.msra.mxu1 %v1000_v12 }
  0x25   :  { %934 = vmatprep.subr.bf16.mxu1 %v1089_v2 }
  0xda   :  { %v70_v13 = vpop.f32.mrb[0].mxu1 }
  0xdb   :  { %v886_v14 = vpop.f32.mrb[1].mxu1  ;;  %v71_v16 = vadd.f32 %v70_v13, %v24_v0  ;;  %v1010_v0 = vld [vmem:[%s1336_s2 + $0x88] sm:$0xff]  }
  0xdc   :  { %v73_v15 = vpop.f32.mrb[2].mxu1 }
  0xdd   :  { %v74_v17 = vadd.f32 %v73_v15, %v25_v1  ;;  %v887_v18 = vpop.f32.mrb[3].mxu1  ;;  %v1011_v1 = vld [vmem:[%s1336_s2 + $0x90] sm:$0xff]  }
  0xdf   :  { %v77_v19 = vpack.c.bf16 %v74_v17, %v71_v16  ;;  %v802_v16 = vld [vmem:[%s1337_s3 + $0x2] ss:$0 sm:$0xff] }
  0xe1   :  { %905 = vmatmul.mubr.bf16.vlgmr.msra.gmra.mrb[4].mxu1 %v77_v19 }
  0xe2   :  { %936 = vmatprep.mubr.msk.bf16.mxu1 %vm1090_vm0, %v1089_v2 }
 0x1b4   :  { %v183_v21 = vpop.f32.mrb[4].mxu1 }
 0x1b5   :  { %v184_v22 = vadd.f32 %v748_v20, %v183_v21  ;;  %v906_v23 = vpop.f32.mrb[5].mxu1 }
 0x1b6   :  { %v186_v24 = vpop.f32.mrb[6].mxu1 }
 0x1b7   :  { %v187_v25 = vadd.f32 %v748_v20, %v186_v24  ;;  %v907_v26 = vpop.f32.mrb[7].mxu1  ;;  %v190_v27 = vmax.f32 %v184_v22, 0.0 }
 0x1b9   :  { %v191_v28 = vmax.f32 %v187_v25, 0.0 }
 0x1bb   :  { %v192_v29 = vpack.c.bf16 %v191_v28, %v190_v27 }
 0x1bd   :  { %909 = vmatpush3.bf16.msra.mxu0 %v192_v29 }
 0x1be   :  { %914 = vmatprep.subr.bf16.mxu0 %v1089_v2 }
 0x1c0   :  { %911 = vmatmul.mubr.msk.bf16.vlgmr.msra.gmra.mrb[0].mxu0 %vm32_vm1, %v1137_v4 }
 0x1c1   :  { %915 = vmatpush3.bf16.msra.mxu0 %v1001_v30  ;;  %930 = vmatprep.mubr.msk.bf16.mxu0 %vm1090_vm0, %v1089_v2 }
 0x1c2   :  { %916 = vmatprep.subr.bf16.mxu0 %v1089_v2 }
 0x1c5   :  { %917 = vmatpush3.bf16.msra.mxu0 %v1002_v31 }
 0x1c6   :  { %918 = vmatprep.subr.bf16.mxu0 %v1089_v2 }
 0x1c9   :  { %919 = vmatpush3.bf16.msra.mxu0 %v1003_v32 }
 0x1ca   :  { %920 = vmatprep.subr.bf16.mxu0 %v1089_v2 }
 0x1cd   :  { %921 = vmatpush3.bf16.msra.mxu0 %v1004_v33 }
 0x1ce   :  { %922 = vmatprep.subr.bf16.mxu0 %v1089_v2 }
 0x1d1   :  { %923 = vmatpush3.bf16.msra.mxu0 %v1005_v34  ;;  %v1017_v34 = vld [vmem:[%s1336_s2 + $0xc0] sm:$0xff]  }
 0x1d2   :  { %924 = vmatprep.subr.bf16.mxu0 %v1089_v2 }
 0x1d5   :  { %925 = vmatpush3.bf16.msra.mxu0 %v1006_v35  ;;  %v1018_v35 = vld [vmem:[%s1336_s2 + $0xc8] sm:$0xff]  }
 0x1d6   :  { %926 = vmatprep.subr.bf16.mxu0 %v1089_v2 }
 0x1d9   :  { %927 = vmatpush3.bf16.msra.mxu0 %v1007_v36  ;;  %v1019_v36 = vld [vmem:[%s1336_s2 + $0xd0] sm:$0xff]  }
 0x1da   :  { %928 = vmatprep.subr.bf16.mxu0 %v1089_v2 }
 0x1dd   :  { %929 = vmatpush3.bf16.msra.mxu0 %v1008_v37  ;;  %v1021_v37 = vld [vmem:[%s1336_s2 + $0xe0] sm:$0xff]  }
 0x1de   :  { %960 = vmatprep.subr.bf16.mxu0 %v1089_v2 }
 0x293   :  { %v227_v38 = vpop.f32.mrb[0].mxu0 }
 0x294   :  { %v912_v39 = vpop.f32.mrb[1].mxu0  ;;  %v228_v41 = vadd.f32 %v227_v38, %v190_v27  ;;  %v1022_v38 = vld [vmem:[%s1336_s2 + $0xe8] sm:$0xff]  }
 0x295   :  { %v230_v40 = vpop.f32.mrb[2].mxu0  ;;  %v1023_v39 = vld [vmem:[%s1336_s2 + $0xf0] sm:$0xff]  }
 0x296   :  { %v231_v42 = vadd.f32 %v230_v40, %v191_v28  ;;  %v913_v43 = vpop.f32.mrb[3].mxu0  ;;  %v1024_v40 = vld [vmem:[%s1336_s2 + $0xf8] sm:$0xff]  }
 0x298   :  { %v234_v44 = vpack.c.bf16 %v231_v42, %v228_v41 }
 0x29a   :  { %931 = vmatmul.mubr.bf16.vlgmr.msra.gmra.mrb[4].mxu0 %v234_v44 }
 0x29b   :  { %962 = vmatprep.mubr.msk.bf16.mxu0 %vm1090_vm0, %v1089_v2 }
 0x36d   :  { %v342_v46 = vpop.f32.mrb[4].mxu0 }
 0x36e   :  { %v343_v47 = vadd.f32 %v775_v45, %v342_v46  ;;  %v932_v48 = vpop.f32.mrb[5].mxu0 }
 0x36f   :  { %v345_v49 = vpop.f32.mrb[6].mxu0  ;;  %v689_v48 = vlaneseq }
 0x370   :  { %v346_v50 = vadd.f32 %v775_v45, %v345_v49  ;;  %v933_v51 = vpop.f32.mrb[7].mxu0  ;;  %v349_v52 = vmul.f32 %v343_v47, %v343_v47 }
 0x371   :  { %v690_v49 = vand.u32 127, %v689_v48 }
 0x372   :  { %351 = vadd.xlane.f32.xlu0 %v349_v52  ;;  %v350_v53 = vmul.f32 %v346_v50, %v346_v50 }
 0x373   :  { %vm691_vm2 = vcmp.lt.s32.totalorder %v690_v49, 32 }
 0x376   :  { %353 = vadd.xlane.f32.xlu0 %v350_v53 }
 0x3ff   :  { %v352_v54 = vpop.xlane.xlu0 %351 }
 0x400   :  { %v355_v55 = vmax.f32 %v352_v54, 1e-24 }
 0x402   :  { %1025 = vrsqrt.f32 %v355_v55 }
 0x403   :  { %v354_v56 = vpop.xlane.xlu0 %353 }
 0x404   :  { %v356_v57 = vmax.f32 %v354_v56, 1e-24 }
 0x406   :  { %1027 = vrsqrt.f32 %v356_v57 }
 0x40c   :  { %v1026_v58 = vpop.eup %1025 }
 0x40d   :  { %v359_v60 = vmul.f32 %v1026_v58, %v343_v47 }
 0x410   :  { %v1028_v59 = vpop.eup %1027 }
 0x411   :  { %v360_v61 = vmul.f32 %v1028_v59, %v346_v50  ;;  %v829_v50 = vld [vmem:[%s1337_s3 + $0x3] ss:$0 sm:$0xff] }
 0x413   :  { %v361_v62 = vpack.c.bf16 %v360_v61, %v359_v60 }
 0x415   :  { %935 = vmatpush3.bf16.msra.mxu1 %v361_v62 }
 0x416   :  { %940 = vmatprep.subr.bf16.mxu1 %v1089_v2 }
 0x418   :  { %937 = vmatmul.mubr.msk.bf16.vlgmr.msra.gmra.mrb[8].mxu1 %vm32_vm1, %v1137_v4 }
 0x419   :  { %941 = vmatpush3.bf16.msra.mxu1 %v1009_v63  ;;  %956 = vmatprep.mubr.msk.bf16.mxu1 %vm1090_vm0, %v1089_v2 }
 0x41a   :  { %942 = vmatprep.subr.bf16.mxu1 %v1089_v2 }
 0x41d   :  { %943 = vmatpush3.bf16.msra.mxu1 %v1010_v0 }
 0x41e   :  { %944 = vmatprep.subr.bf16.mxu1 %v1089_v2 }
 0x421   :  { %945 = vmatpush3.bf16.msra.mxu1 %v1011_v1 }
 0x422   :  { %946 = vmatprep.subr.bf16.mxu1 %v1089_v2 }
 0x425   :  { %947 = vmatpush3.bf16.msra.mxu1 %v1012_v3 }
 0x426   :  { %948 = vmatprep.subr.bf16.mxu1 %v1089_v2 }
 0x429   :  { %949 = vmatpush3.bf16.msra.mxu1 %v1013_v5 }
 0x42a   :  { %950 = vmatprep.subr.bf16.mxu1 %v1089_v2 }
 0x42d   :  { %951 = vmatpush3.bf16.msra.mxu1 %v1014_v6 }
 0x42e   :  { %952 = vmatprep.subr.bf16.mxu1 %v1089_v2 }
 0x431   :  { %953 = vmatpush3.bf16.msra.mxu1 %v1015_v7 }
 0x432   :  { %954 = vmatprep.subr.bf16.mxu1 %v1089_v2 }
 0x435   :  { %955 = vmatpush3.bf16.msra.mxu1 %v1016_v8 }
 0x4eb   :  { %v396_v9 = vpop.f32.mrb[8].mxu1 }
 0x4ec   :  { %v938_v10 = vpop.f32.mrb[9].mxu1  ;;  %v397_v12 = vadd.f32 %v396_v9, %v359_v60 }
 0x4ed   :  { %v399_v11 = vpop.f32.mrb[10].mxu1 }
 0x4ee   :  { %v400_v13 = vadd.f32 %v399_v11, %v360_v61  ;;  %v939_v14 = vpop.f32.mrb[11].mxu1 }
 0x4f0   :  { %v403_v15 = vpack.c.bf16 %v400_v13, %v397_v12 }
 0x4f2   :  { %957 = vmatmul.mubr.bf16.vlgmr.msra.gmra.mrb[12].mxu1 %v403_v15 }
 0x5c5   :  { %v511_v17 = vpop.f32.mrb[12].mxu1 }
 0x5c6   :  { %v512_v18 = vadd.f32 %v802_v16, %v511_v17  ;;  %v958_v19 = vpop.f32.mrb[13].mxu1 }
 0x5c7   :  { %v514_v20 = vpop.f32.mrb[14].mxu1 }
 0x5c8   :  { %v515_v21 = vadd.f32 %v802_v16, %v514_v20  ;;  %v959_v22 = vpop.f32.mrb[15].mxu1  ;;  %v518_v23 = vmul.f32 %v512_v18, %v512_v18 }
 0x5ca   :  { %520 = vadd.xlane.f32.xlu1 %v518_v23  ;;  %v519_v24 = vmul.f32 %v515_v21, %v515_v21 }
 0x5ce   :  { %522 = vadd.xlane.f32.xlu1 %v519_v24 }
 0x657   :  { %v521_v25 = vpop.xlane.xlu1 %520 }
 0x658   :  { %v524_v26 = vmax.f32 %v521_v25, 1e-24 }
 0x65a   :  { %1029 = vrsqrt.f32 %v524_v26 }
 0x65b   :  { %v523_v27 = vpop.xlane.xlu1 %522 }
 0x65c   :  { %v525_v28 = vmax.f32 %v523_v27, 1e-24 }
 0x65e   :  { %1031 = vrsqrt.f32 %v525_v28 }
 0x664   :  { %v1030_v29 = vpop.eup %1029 }
 0x665   :  { %v528_v30 = vmul.f32 %v1030_v29, %v512_v18 }
 0x667   :  { %530 = vst [vmem:[#allocation4] sm:$0xff] %v528_v30 }
 0x668   :  { %v1032_v31 = vpop.eup %1031 }
 0x669   :  { %v529_v32 = vmul.f32 %v1032_v31, %v515_v21 }
 0x66b   :  { %v532_v33 = vpack.c.bf16 %v529_v32, %v528_v30  ;;  %531 = vst [vmem:[#allocation4 + $0x8] sm:$0xff] %v529_v32 }
 0x66d   :  { %961 = vmatpush3.bf16.msra.mxu0 %v532_v33 }
 0x66e   :  { %966 = vmatprep.subr.bf16.mxu0 %v1089_v2 }
 0x670   :  { %963 = vmatmul.mubr.msk.bf16.vlgmr.msra.gmra.mrb[8].mxu0 %vm32_vm1, %v1137_v4  ;;  %v1020_v4 = vld [vmem:[%s1336_s2 + $0xd8] sm:$0xff]   ;;  %s1091_s2 = smov [#allocation4]  }
 0x671   :  { %967 = vmatpush3.bf16.msra.mxu0 %v1017_v34  ;;  %982 = vmatprep.mubr.msk.bf16.mxu0 %vm1090_vm0, %v1089_v2  ;;  %s731_s3 = sshll.u32 %s1091_s2, 4  ;;  %s732_s3 = int_to_ptr.vmem [resolvable:$true] %s731_s3 }
 0x672   :  { %968 = vmatprep.subr.bf16.mxu0 %v1089_v2  ;;  %s1041_s15 = scalar_lea.vmem %s732_s3, 256  ;;  %p1046_p1 = scmp.lt.s32.totalorder %s732_s3, %s732_s3 }
 0x673   :  { %p1042_p0 = scmp.ne.s32.totalorder %s732_s3, %s1041_s15  ;;  %p1047_p2 = scmp.lt.s32.totalorder %s1041_s15, %s1041_s15 }
 0x675   :  { %969 = vmatpush3.bf16.msra.mxu0 %v1018_v35  ;;  %p1048_p3 = por %p1047_p2, %p1046_p1 }
 0x676   :  { %970 = vmatprep.subr.bf16.mxu0 %v1089_v2 }
 0x677   :  { %p1049_p4 = pnand %p1048_p3, %p1042_p0 }
 0x679   :  { %971 = vmatpush3.bf16.msra.mxu0 %v1019_v36 }
 0x67a   :  { %972 = vmatprep.subr.bf16.mxu0 %v1089_v2 }
 0x67d   :  { %973 = vmatpush3.bf16.msra.mxu0 %v1020_v4 }
 0x67e   :  { %974 = vmatprep.subr.bf16.mxu0 %v1089_v2 }
 0x681   :  { %975 = vmatpush3.bf16.msra.mxu0 %v1021_v37 }
 0x682   :  { %976 = vmatprep.subr.bf16.mxu0 %v1089_v2 }
 0x685   :  { %977 = vmatpush3.bf16.msra.mxu0 %v1022_v38 }
 0x686   :  { %978 = vmatprep.subr.bf16.mxu0 %v1089_v2 }
 0x689   :  { %979 = vmatpush3.bf16.msra.mxu0 %v1023_v39 }
 0x68a   :  { %980 = vmatprep.subr.bf16.mxu0 %v1089_v2 }
 0x68d   :  { %981 = vmatpush3.bf16.msra.mxu0 %v1024_v40 }
 0x743   :  { %v567_v41 = vpop.f32.mrb[8].mxu0 }
 0x744   :  { %v964_v42 = vpop.f32.mrb[9].mxu0  ;;  %v568_v44 = vadd.f32 %v567_v41, %v528_v30 }
 0x745   :  { %v570_v43 = vpop.f32.mrb[10].mxu0 }
 0x746   :  { %v571_v45 = vadd.f32 %v570_v43, %v529_v32  ;;  %v965_v46 = vpop.f32.mrb[11].mxu0 }
 0x748   :  { %v574_v47 = vpack.c.bf16 %v571_v45, %v568_v44 }
 0x74a   :  { %983 = vmatmul.mubr.bf16.vlgmr.msra.gmra.mrb[12].mxu0 %v574_v47 }
 0x81d   :  { %v682_v2 = vpop.f32.mrb[12].mxu0 }
 0x81e   :  { %v683_v51 = vadd.f32 %v829_v50, %v682_v2  ;;  %v984_v52 = vpop.f32.mrb[13].mxu0 }
 0x81f   :  { %v685_v53 = vpop.f32.mrb[14].mxu0 }
 0x820   :  { %v686_v54 = vadd.f32 %v829_v50, %v685_v53  ;;  %v985_v55 = vpop.f32.mrb[15].mxu0  ;;  %v692_v56 = vsel %vm691_vm2, %v683_v51, -1e+30 }
 0x821   :  { %694 = vmax.xlane.f32.xlu0 %v692_v56 }
 0x822   :  { %v693_v57 = vsel %vm691_vm2, %v686_v54, -1e+30 }
 0x823   :  { %696 = vmax.xlane.f32.xlu1 %v693_v57 }
 0x8ae   :  { %v695_v58 = vpop.xlane.xlu0 %694 }
 0x8af   :  { %v698_v59 = vsub.f32 %v692_v56, %v695_v58 }
 0x8b0   :  { %v697_v60 = vpop.xlane.xlu1 %696 }
 0x8b1   :  { %v700_v61 = vmul.f32 1.442695, %v698_v59  ;;  %v699_v62 = vsub.f32 %v693_v57, %v697_v60 }
 0x8b3   :  { %1033 = vpow2.f32 %v700_v61  ;;  %v702_v63 = vmul.f32 1.442695, %v699_v62 }
 0x8b5   :  { %1035 = vpow2.f32 %v702_v63 }
 0x8bd   :  { %v1034_v0 = vpop.eup %1033 }
 0x8be   :  { %704 = vadd.xlane.f32.xlu0 %v1034_v0 }
 0x8bf   :  { %v1036_v1 = vpop.eup %1035 }
 0x8c0   :  { %706 = vadd.xlane.f32.xlu1 %v1036_v1 }
 0x8c1   :  { %1052 = shalt.err (!%p1049_p4)
}
 0x8c2   :  { %s1053_s18 = scalar_lea.hbm %s1339_s5, 256 }
 0x8c3   :  { %p1054_p5 = scmp.ne.s32.totalorder %s1339_s5, %s1053_s18  ;;  %p1057_p6 = scmp.lt.u32.totalorder %s1053_s18, %s1339_s5 }
 0x8c5   :  { %p1059_p7 = pnand %p1057_p6, %p1054_p5 }
 0x8c7   :  { %1062 = shalt.err (!%p1059_p7)
}
 0x8c8   :  { %s1092_s23 = smov 128   ;;  %s1093_s1 = smov 8  }
 0x8c9   :  { %737 = dma.vmem_to_hbm [thread:$0]  %s732_s3, 256, %s1339_s5, [#allocation5], %s1092_s23, %s1092_s23, %s1093_s1  }
 0x8ca   :  { %s1094_s0 = smov [#allocation2]  }
 0x8cb   :  { %s719_s26 = sshll.u32 %s1094_s0, 4  ;;  %s720_s26 = int_to_ptr.vmem [resolvable:$true] %s719_s26 }
 0x8cc   :  { %s1063_s27 = scalar_lea.vmem %s720_s26, 256  ;;  %p1068_p9 = scmp.lt.s32.totalorder %s720_s26, %s720_s26 }
 0x8cd   :  { %p1064_p8 = scmp.ne.s32.totalorder %s720_s26, %s1063_s27  ;;  %p1069_p10 = scmp.lt.s32.totalorder %s1063_s27, %s1063_s27 }
 0x8cf   :  { %p1070_p11 = por %p1069_p10, %p1068_p9 }
 0x8d1   :  { %p1071_p12 = pnand %p1070_p11, %p1064_p8 }
 0x94b   :  { %v705_v3 = vpop.xlane.xlu0 %704 }
 0x94c   :  { %1037 = vrcp.f32 %v705_v3 }
 0x94d   :  { %v707_v5 = vpop.xlane.xlu1 %706 }
 0x94e   :  { %1039 = vrcp.f32 %v707_v5 }
 0x956   :  { %v1038_v6 = vpop.eup %1037 }
 0x957   :  { %v710_v7 = vmul.f32 %v1038_v6, %v1034_v0 }
 0x958   :  { %v1040_v8 = vpop.eup %1039 }
 0x959   :  { %v711_v9 = vmul.f32 %v1040_v8, %v1036_v1  ;;  %712 = vst [vmem:[#allocation2] sm:$0xff] %v710_v7 }
 0x95b   :  { %713 = vst [vmem:[#allocation2 + $0x8] sm:$0xff] %v711_v9 }
 0x95c   :  { %1074 = shalt.err (!%p1071_p12)
}
 0x95d   :  { %s1075_s29 = scalar_lea.hbm %s1338_s4, 256 }
 0x95e   :  { %p1076_p13 = scmp.ne.s32.totalorder %s1338_s4, %s1075_s29  ;;  %p1079_p0 = scmp.lt.u32.totalorder %s1075_s29, %s1338_s4 }
 0x960   :  { %p1081_p1 = pnand %p1079_p0, %p1076_p13 }
 0x962   :  { %1084 = shalt.err (!%p1081_p1)
}
 0x963   :  { %725 = dma.vmem_to_hbm [thread:$0]  %s720_s26, 256, %s1338_s4, [#allocation3], %s1092_s23, %s1092_s23, %s1093_s1  }
 0x964   :  { %1085 = dma.done.wait [#allocation3], 256  }
 0x965   :  { %1086 = vsyncadd [#allocation3], 4294967040 }
 0x966   :  { %1087 = dma.done.wait [#allocation5], 256  }
 0x967   :  { %1088 = vsyncadd [#allocation5], 4294967040 }
 0x968   :  { %744 = vsyncpa [#allocation3], 1 }
 0x969   :  { %745 = vsyncpa [#allocation5], 1 }

</bundles_post_ra>
